<compile_context>
chip_gen: v6e
topology: v6e:2x2x1
jax: 0.10.0
libtpu: 0.0.40
codegen_flags: <defaults>
</compile_context>

<pallas_src>
import functools

import jax
import jax.numpy as jnp
from jax.experimental import pallas as pl
from jax.experimental.pallas import tpu as pltpu

_LANE = 128  # vreg lane width


def _round_up(x, m):
    return (x + m - 1) // m * m


def _sublane(dtype):
    # f32 -> 8 rows per vreg; 16-bit dtypes pack 16 rows along sublanes.
    return 8 if dtype == jnp.float32 else 16


# ---------------------------------------------------------------------------
# Fused MLP kernel: one grid step = one batch tile through the whole network.
# ---------------------------------------------------------------------------
def _fused_mlp_kernel(*refs, num_hidden, unroll_layers):
    if num_hidden > 0:
        (x_ref, w_in_ref, b_in_ref, w_hid_ref, b_hid_ref,
         w_out_ref, b_out_ref, o_ref) = refs
    else:
        x_ref, w_in_ref, b_in_ref, w_out_ref, b_out_ref, o_ref = refs
        w_hid_ref = b_hid_ref = None

    cdt = w_in_ref.dtype  # MXU input dtype (f32 or bf16); accumulation is f32

    # Input layer + ReLU.
    h = jnp.dot(x_ref[...], w_in_ref[...], preferred_element_type=jnp.float32)
    h = jnp.maximum(h + b_in_ref[...], 0.0).astype(cdt)

    if num_hidden > 0:
        if unroll_layers:
            # Few layers: static unroll, static weight indexing.
            for l in range(num_hidden):
                a = jnp.dot(h, w_hid_ref[l],
                            preferred_element_type=jnp.float32)
                h = jnp.maximum(a + b_hid_ref[l], 0.0).astype(cdt)
        else:
            # Many layers: fori_loop with dynamic indexing into the stacked
            # resident weights keeps the instruction stream / compile bounded.
            def body(l, hc):
                a = jnp.dot(hc, w_hid_ref[l],
                            preferred_element_type=jnp.float32)
                return jnp.maximum(a + b_hid_ref[l], 0.0).astype(cdt)
            h = jax.lax.fori_loop(0, num_hidden, body, h, unroll=2)

    y = jnp.dot(h, w_out_ref[...], preferred_element_type=jnp.float32)
    o_ref[...] = (y + b_out_ref[...]).astype(o_ref.dtype)


# ---------------------------------------------------------------------------
# Parameter init + packing.
# ---------------------------------------------------------------------------
def init_value_net_params(key, input_size, output_size, num_layers,
                          hidden_size):
    """PyTorch-like uniform(-1/sqrt(fan_in), 1/sqrt(fan_in)) init.
    Weights stored as (in_features, out_features) so y = x @ W + b."""
    params = []
    dims = ([(input_size, hidden_size)]
            + [(hidden_size, hidden_size)] * num_layers
            + [(hidden_size, output_size)])
    for fan_in, fan_out in dims:
        key, kw, kb = jax.random.split(key, 3)
        bound = 1.0 / float(fan_in) ** 0.5
        w = jax.random.uniform(kw, (fan_in, fan_out), jnp.float32,
                               -bound, bound)
        b = jax.random.uniform(kb, (fan_out,), jnp.float32, -bound, bound)
        params.append((w, b))
    return params


def pack_value_net_params(params, compute_dtype=jnp.float32):
    """Pad hidden/output feature dims to 128 lanes (lane-dense stores), the
    input K dim only to the sublane tile, stack hidden layers, and cast the
    weights to `compute_dtype` (biases stay f32: they add to the f32 acc).
    Zero padding keeps the math exact (padded lanes stay 0 through ReLU)."""
    (w0, b0) = params[0]
    (wN, bN) = params[-1]
    hidden = params[1:-1]

    input_size, hidden_size = w0.shape
    output_size = wN.shape[1]
    sub = _sublane(compute_dtype)
    in_k = _round_up(input_size, sub)        # K dim: sublane aligned only
    h_p = _round_up(hidden_size, _LANE)      # lane-dense
    out_p = _round_up(output_size, _LANE)    # lane-dense output stores

    def pad_w(w, r, c):
        return jnp.pad(w, ((0, r - w.shape[0]),
                           (0, c - w.shape[1]))).astype(compute_dtype)

    def pad_b(b, c):
        return jnp.pad(b, (0, c - b.shape[0])).astype(jnp.float32).reshape(1, c)

    num_hidden = len(hidden)
    arrays = dict(
        w_in=pad_w(w0, in_k, h_p), b_in=pad_b(b0, h_p),
        w_out=pad_w(wN, h_p, out_p), b_out=pad_b(bN, out_p),
    )
    if num_hidden > 0:
        arrays["w_hid"] = jnp.stack([pad_w(w, h_p, h_p) for (w, _) in hidden])
        arrays["b_hid"] = jnp.stack([pad_b(b, h_p) for (_, b) in hidden])
    else:
        # Placeholders only (never passed to the kernel when num_hidden == 0).
        arrays["w_hid"] = jnp.zeros((1, h_p, h_p), compute_dtype)
        arrays["b_hid"] = jnp.zeros((1, 1, h_p), jnp.float32)

    static = dict(num_hidden=num_hidden, output_size=output_size)
    return arrays, static


# ---------------------------------------------------------------------------
# Forward pass (one fused pallas_call).
# ---------------------------------------------------------------------------
def _resident(arr):
    """Full-array VMEM block whose index_map is constant across the batch
    grid -> the block stays resident (no per-step weight DMA)."""
    shape = tuple(arr.shape)
    return pl.BlockSpec(shape, lambda i: (0,) * len(shape))


@functools.partial(jax.jit,
                   static_argnames=("num_hidden", "output_size", "tb_max"))
def _forward_impl(x, w_in, b_in, w_hid, b_hid, w_out, b_out,
                  *, num_hidden, output_size, tb_max=512):
    B, in_feat = x.shape
    cdt = w_in.dtype
    sub = _sublane(cdt)
    in_k = w_in.shape[0]
    h_p = w_in.shape[1]
    out_p = w_out.shape[1]

    # ---- batch tiling -------------------------------------------------
    # Large tiles (up to tb_max rows) amortize the ~0.35 us per-grid-step
    # overhead and keep long LHS runs on the MXU; whenever B exceeds one
    # sublane tile we force >=2 grid steps so the "parallel" axis can shard
    # across v7x's two TensorCores.
    if B <= sub:
        tb = sub
    else:
        half = -(-B // 2)  # ceil(B/2) -> at least 2 grid steps
        tb = max(sub, min(tb_max, _round_up(half, sub)))
    b_pad = _round_up(B, tb)

    # Only the batch dim is padded; the K dim is already sublane-aligned.
    x_p = jnp.pad(x.astype(cdt), ((0, b_pad - B), (0, in_k - in_feat)))

    x_spec = pl.BlockSpec((tb, in_k), lambda i: (i, 0))
    out_spec = pl.BlockSpec((tb, out_p), lambda i: (i, 0))

    if num_hidden > 0:
        operands = (x_p, w_in, b_in, w_hid, b_hid, w_out, b_out)
        in_specs = [x_spec, _resident(w_in), _resident(b_in),
                    _resident(w_hid), _resident(b_hid),
                    _resident(w_out), _resident(b_out)]
    else:
        # Skip the dummy hidden-layer arrays entirely (no pointless DMA/VMEM).
        operands = (x_p, w_in, b_in, w_out, b_out)
        in_specs = [x_spec, _resident(w_in), _resident(b_in),
                    _resident(w_out), _resident(b_out)]

    # ---- explicit VMEM budget ------------------------------------------
    # Double-buffered-pipeline estimate, capped at 64 MiB (valid on v7x too).
    weight_bytes = sum(int(a.size) * a.dtype.itemsize for a in operands[1:])
    io_bytes = tb * in_k * x_p.dtype.itemsize + tb * out_p * 4
    act_bytes = 4 * tb * h_p * 4
    est = 2 * (weight_bytes + io_bytes) + act_bytes
    vmem_limit = int(min(max(2 * est, 16 * 1024 * 1024), 64 * 1024 * 1024))

    kernel = functools.partial(_fused_mlp_kernel, num_hidden=num_hidden,
                               unroll_layers=(num_hidden <= 4))

    out_full = pl.pallas_call(
        kernel,
        out_shape=jax.ShapeDtypeStruct((b_pad, out_p), jnp.float32),
        grid_spec=pltpu.PrefetchScalarGridSpec(
            num_scalar_prefetch=0,
            grid=(b_pad // tb,),
            in_specs=in_specs,
            out_specs=out_spec,
        ),
        compiler_params=pltpu.CompilerParams(
            dimension_semantics=("parallel",),
            vmem_limit_bytes=vmem_limit),
    )(*operands)

    return out_full[:B, :output_size]


def value_net_forward(packed_params, x, tb_max=512):
    arrays, static = packed_params
    return _forward_impl(
        x, arrays["w_in"], arrays["b_in"], arrays["w_hid"], arrays["b_hid"],
        arrays["w_out"], arrays["b_out"],
        num_hidden=static["num_hidden"], output_size=static["output_size"],
        tb_max=tb_max)


# ---------------------------------------------------------------------------
def _reference_forward(params, x):
    (w0, b0) = params[0]
    h = jnp.maximum(
        jnp.dot(x, w0, precision=jax.lax.Precision.HIGHEST) + b0, 0.0)
    for (w, b) in params[1:-1]:
        h = jnp.maximum(
            jnp.dot(h, w, precision=jax.lax.Precision.HIGHEST) + b, 0.0)
    (wN, bN) = params[-1]
    return jnp.dot(h, wN, precision=jax.lax.Precision.HIGHEST) + bN


if __name__ == "__main__":
    key = jax.random.PRNGKey(0)

    # --- Config A: small net (static-unroll path, single batch tile, f32) ---
    key, kp, kx = jax.random.split(key, 3)
    params_a = init_value_net_params(kp, input_size=16, output_size=4,
                                     num_layers=2, hidden_size=32)
    x_a = jax.random.normal(kx, (2, 16), jnp.float32)
    out_a = value_net_forward(pack_value_net_params(params_a), x_a)
    out_a = jax.block_until_ready(out_a)
    ref_a = _reference_forward(params_a, x_a)
    assert out_a.shape == (2, 4)
    assert jnp.allclose(out_a, ref_a, atol=2e-5, rtol=1e-5), (
        f"f32 max abs err {jnp.max(jnp.abs(out_a - ref_a))}")

    # --- Config B: deeper net (fori_loop path, 2-step parallel grid, f32) ---
    key, kp, kx = jax.random.split(key, 3)
    params_b = init_value_net_params(kp, input_size=24, output_size=3,
                                     num_layers=6, hidden_size=48)
    x_b = jax.random.normal(kx, (16, 24), jnp.float32)
    out_b = value_net_forward(pack_value_net_params(params_b), x_b)
    out_b = jax.block_until_ready(out_b)
    ref_b = _reference_forward(params_b, x_b)
    assert out_b.shape == (16, 3)
    assert jnp.allclose(out_b, ref_b, atol=1e-4, rtol=1e-4), (
        f"deep f32 max abs err {jnp.max(jnp.abs(out_b - ref_b))}")

    # --- Config C: bf16 MXU inputs with f32 accumulation (loose tolerance) --
    out_c = value_net_forward(
        pack_value_net_params(params_a, compute_dtype=jnp.bfloat16), x_a)
    out_c = jax.block_until_ready(out_c)
    assert out_c.shape == (2, 4)
    assert jnp.allclose(out_c, ref_a, atol=5e-2, rtol=5e-2), (
        f"bf16 max abs err {jnp.max(jnp.abs(out_c - ref_a))}")

    print("KERNEL_OK")
</pallas_src>

<mosaic_0001>
module attributes {stable_mosaic.version = 11 : i64} {
  func.func @_fused_mlp_kernel(%arg0: i32, %arg1: memref<8x16xf32, #tpu.memory_space<vmem>>, %arg2: memref<16x128xf32, #tpu.memory_space<vmem>>, %arg3: memref<1x128xf32, #tpu.memory_space<vmem>>, %arg4: memref<2x128x128xf32, #tpu.memory_space<vmem>>, %arg5: memref<2x1x128xf32, #tpu.memory_space<vmem>>, %arg6: memref<128x128xf32, #tpu.memory_space<vmem>>, %arg7: memref<1x128xf32, #tpu.memory_space<vmem>>, %arg8: memref<8x128xf32, #tpu.memory_space<vmem>>) attributes {dimension_semantics = [#tpu.dimension_semantics<parallel>], iteration_bounds = array<i64: 1>, scalar_prefetch = 0 : i64, scratch_operands = 0 : i64, tpu.core_type = #tpu.core_type<tc>, window_params = [{transform_indices = @transform_0, window_bounds = array<i64: 8, 16>}, {pipeline_mode = #tpu.pipeline_mode<synchronous>, transform_indices = @transform_1, window_bounds = array<i64: 16, 128>}, {pipeline_mode = #tpu.pipeline_mode<synchronous>, transform_indices = @transform_2, window_bounds = array<i64: 1, 128>}, {pipeline_mode = #tpu.pipeline_mode<synchronous>, transform_indices = @transform_3, window_bounds = array<i64: 2, 128, 128>}, {pipeline_mode = #tpu.pipeline_mode<synchronous>, transform_indices = @transform_4, window_bounds = array<i64: 2, 1, 128>}, {pipeline_mode = #tpu.pipeline_mode<synchronous>, transform_indices = @transform_5, window_bounds = array<i64: 128, 128>}, {pipeline_mode = #tpu.pipeline_mode<synchronous>, transform_indices = @transform_6, window_bounds = array<i64: 1, 128>}, {transform_indices = @transform_7, window_bounds = array<i64: 8, 128>}]} {
    %c0 = arith.constant 0 : index
    %c0_0 = arith.constant 0 : index
    %0 = vector.load %arg1[%c0, %c0_0] : memref<8x16xf32, #tpu.memory_space<vmem>>, vector<8x16xf32>
    %c0_1 = arith.constant 0 : index
    %c0_2 = arith.constant 0 : index
    %1 = vector.load %arg2[%c0_1, %c0_2] : memref<16x128xf32, #tpu.memory_space<vmem>>, vector<16x128xf32>
    %cst = arith.constant dense<0.000000e+00> : vector<8x128xf32>
    %2 = tpu.matmul %0, %1, %cst {dimension_numbers = #tpu.dot_dimension_numbers<[1], [0], [0], [1], [0, 0, 1, 1], [], []>} : vector<8x16xf32>, vector<16x128xf32>, vector<8x128xf32> -> vector<8x128xf32>
    %c0_3 = arith.constant 0 : index
    %c0_4 = arith.constant 0 : index
    %3 = vector.load %arg3[%c0_3, %c0_4] : memref<1x128xf32, #tpu.memory_space<vmem>>, vector<1x128xf32>
    %4 = vector.broadcast %3 : vector<1x128xf32> to vector<8x128xf32>
    %5 = arith.addf %2, %4 : vector<8x128xf32>
    %cst_5 = arith.constant 0.000000e+00 : f32
    %6 = vector.broadcast %cst_5 : f32 to vector<8x128xf32>
    %7 = arith.maximumf %5, %6 : vector<8x128xf32>
    %c0_6 = arith.constant 0 : index
    %c0_7 = arith.constant 0 : index
    %c0_8 = arith.constant 0 : index
    %8 = vector.load %arg4[%c0_6, %c0_7, %c0_8] : memref<2x128x128xf32, #tpu.memory_space<vmem>>, vector<1x128x128xf32>
    %9 = vector.shape_cast %8 : vector<1x128x128xf32> to vector<128x128xf32>
    %cst_9 = arith.constant dense<0.000000e+00> : vector<8x128xf32>
    %10 = tpu.matmul %7, %9, %cst_9 {dimension_numbers = #tpu.dot_dimension_numbers<[1], [0], [0], [1], [0, 0, 1, 1], [], []>} : vector<8x128xf32>, vector<128x128xf32>, vector<8x128xf32> -> vector<8x128xf32>
    %c0_10 = arith.constant 0 : index
    %c0_11 = arith.constant 0 : index
    %c0_12 = arith.constant 0 : index
    %11 = vector.load %arg5[%c0_10, %c0_11, %c0_12] : memref<2x1x128xf32, #tpu.memory_space<vmem>>, vector<1x1x128xf32>
    %12 = vector.shape_cast %11 : vector<1x1x128xf32> to vector<1x128xf32>
    %13 = vector.broadcast %12 : vector<1x128xf32> to vector<8x128xf32>
    %14 = arith.addf %10, %13 : vector<8x128xf32>
    %cst_13 = arith.constant 0.000000e+00 : f32
    %15 = vector.broadcast %cst_13 : f32 to vector<8x128xf32>
    %16 = arith.maximumf %14, %15 : vector<8x128xf32>
    %c1 = arith.constant 1 : index
    %c0_14 = arith.constant 0 : index
    %c0_15 = arith.constant 0 : index
    %17 = vector.load %arg4[%c1, %c0_14, %c0_15] : memref<2x128x128xf32, #tpu.memory_space<vmem>>, vector<1x128x128xf32>
    %18 = vector.shape_cast %17 : vector<1x128x128xf32> to vector<128x128xf32>
    %cst_16 = arith.constant dense<0.000000e+00> : vector<8x128xf32>
    %19 = tpu.matmul %16, %18, %cst_16 {dimension_numbers = #tpu.dot_dimension_numbers<[1], [0], [0], [1], [0, 0, 1, 1], [], []>} : vector<8x128xf32>, vector<128x128xf32>, vector<8x128xf32> -> vector<8x128xf32>
    %c1_17 = arith.constant 1 : index
    %c0_18 = arith.constant 0 : index
    %c0_19 = arith.constant 0 : index
    %20 = vector.load %arg5[%c1_17, %c0_18, %c0_19] : memref<2x1x128xf32, #tpu.memory_space<vmem>>, vector<1x1x128xf32>
    %21 = vector.shape_cast %20 : vector<1x1x128xf32> to vector<1x128xf32>
    %22 = vector.broadcast %21 : vector<1x128xf32> to vector<8x128xf32>
    %23 = arith.addf %19, %22 : vector<8x128xf32>
    %cst_20 = arith.constant 0.000000e+00 : f32
    %24 = vector.broadcast %cst_20 : f32 to vector<8x128xf32>
    %25 = arith.maximumf %23, %24 : vector<8x128xf32>
    %c0_21 = arith.constant 0 : index
    %c0_22 = arith.constant 0 : index
    %26 = vector.load %arg6[%c0_21, %c0_22] : memref<128x128xf32, #tpu.memory_space<vmem>>, vector<128x128xf32>
    %cst_23 = arith.constant dense<0.000000e+00> : vector<8x128xf32>
    %27 = tpu.matmul %25, %26, %cst_23 {dimension_numbers = #tpu.dot_dimension_numbers<[1], [0], [0], [1], [0, 0, 1, 1], [], []>} : vector<8x128xf32>, vector<128x128xf32>, vector<8x128xf32> -> vector<8x128xf32>
    %c0_24 = arith.constant 0 : index
    %c0_25 = arith.constant 0 : index
    %28 = vector.load %arg7[%c0_24, %c0_25] : memref<1x128xf32, #tpu.memory_space<vmem>>, vector<1x128xf32>
    %29 = vector.broadcast %28 : vector<1x128xf32> to vector<8x128xf32>
    %30 = arith.addf %27, %29 : vector<8x128xf32>
    %c0_26 = arith.constant 0 : index
    %c0_27 = arith.constant 0 : index
    %31 = vector.load %arg8[%c0_26, %c0_27] : memref<8x128xf32, #tpu.memory_space<vmem>>, vector<8x128xf32>
    tpu.vector_store %arg8[%c0_26, %c0_27], %30 {strides = array<i32>} : memref<8x128xf32, #tpu.memory_space<vmem>>, vector<8x128xf32>,
    return
  }
  func.func @transform_0(%arg0: i32) -> (i32, i32) {
    %c0_i32 = arith.constant 0 : i32
    %c0_i32_0 = arith.constant 0 : i32
    return %arg0, %c0_i32 : i32, i32
  }
  func.func @transform_1(%arg0: i32) -> (i32, i32) {
    %c0_i32 = arith.constant 0 : i32
    %c0_i32_0 = arith.constant 0 : i32
    %c0_i32_1 = arith.constant 0 : i32
    return %c0_i32, %c0_i32_0 : i32, i32
  }
  func.func @transform_2(%arg0: i32) -> (i32, i32) {
    %c0_i32 = arith.constant 0 : i32
    %c0_i32_0 = arith.constant 0 : i32
    %c0_i32_1 = arith.constant 0 : i32
    return %c0_i32, %c0_i32_0 : i32, i32
  }
  func.func @transform_3(%arg0: i32) -> (i32, i32, i32) {
    %c0_i32 = arith.constant 0 : i32
    %c0_i32_0 = arith.constant 0 : i32
    %c0_i32_1 = arith.constant 0 : i32
    %c0_i32_2 = arith.constant 0 : i32
    return %c0_i32, %c0_i32_0, %c0_i32_1 : i32, i32, i32
  }
  func.func @transform_4(%arg0: i32) -> (i32, i32, i32) {
    %c0_i32 = arith.constant 0 : i32
    %c0_i32_0 = arith.constant 0 : i32
    %c0_i32_1 = arith.constant 0 : i32
    %c0_i32_2 = arith.constant 0 : i32
    return %c0_i32, %c0_i32_0, %c0_i32_1 : i32, i32, i32
  }
  func.func @transform_5(%arg0: i32) -> (i32, i32) {
    %c0_i32 = arith.constant 0 : i32
    %c0_i32_0 = arith.constant 0 : i32
    %c0_i32_1 = arith.constant 0 : i32
    return %c0_i32, %c0_i32_0 : i32, i32
  }
  func.func @transform_6(%arg0: i32) -> (i32, i32) {
    %c0_i32 = arith.constant 0 : i32
    %c0_i32_0 = arith.constant 0 : i32
    %c0_i32_1 = arith.constant 0 : i32
    return %c0_i32, %c0_i32_0 : i32, i32
  }
  func.func @transform_7(%arg0: i32) -> (i32, i32) {
    %c0_i32 = arith.constant 0 : i32
    %c0_i32_0 = arith.constant 0 : i32
    return %arg0, %c0_i32 : i32, i32
  }
}

</mosaic_0001>

<bundles_post_ra>
// kernel: _forward_impl.1
= control target key start
LH: loop header
LB: loop body
LE: loop exit
PB: predicated region body
PF: predicated region fallthrough
CT: control target
= control target key end

     0   :  { %12 = vsyncpa [#allocation3], 0  ;;  %s817_s0 = inlined_call_operand.vmem [shape: f32[8,16], index: 0, kind: input, shape index: {}]   ;;  %s818_s1 = inlined_call_operand.hbm [shape: f32[16,128], index: 1, kind: input, shape index: {}]   ;;  %s819_s2 = inlined_call_operand.vmem [shape: f32[1,128], index: 2, kind: input, shape index: {}]   ;;  %s820_s3 = inlined_call_operand.hbm [shape: f32[2,128,128], index: 3, kind: input, shape index: {}]   ;;  %s821_s4 = inlined_call_operand.vmem [shape: f32[2,1,128], index: 4, kind: input, shape index: {}]   ;;  %s822_s5 = inlined_call_operand.hbm [shape: f32[128,128], index: 5, kind: input, shape index: {}]   ;;  %s823_s6 = inlined_call_operand.vmem [shape: f32[1,128], index: 6, kind: input, shape index: {}]   ;;  %s824_s7 = inlined_call_operand.vmem [shape: f32[8,128], index: 7, kind: output, shape index: {}]  }
   0x1   :  { %13 = vsyncpa [#allocation5], 0  ;;  %s685_s24 = smov [#allocation4]   ;;  %s686_s26 = smov [#allocation2]  }
   0x2   :  { %s35_s25 = sshll.u32 %s685_s24, 4  ;;  %s21_s27 = sshll.u32 %s686_s26, 4  ;;  %s36_s25 = int_to_ptr.vmem [resolvable:$true] %s35_s25  ;;  %s22_s27 = int_to_ptr.vmem [resolvable:$true] %s21_s27 }
   0x3   :  { %s629_s28 = scalar_lea.vmem %s36_s25, 4096  ;;  %p634_p1 = scmp.lt.s32.totalorder %s36_s25, %s36_s25 }
   0x4   :  { %p630_p0 = scmp.ne.s32.totalorder %s36_s25, %s629_s28  ;;  %p635_p2 = scmp.lt.s32.totalorder %s629_s28, %s629_s28 }
   0x6   :  { %p636_p3 = por %p635_p2, %p634_p1 }
   0x8   :  { %p637_p4 = pnand %p636_p3, %p630_p0 }
   0xa   :  { %640 = shalt.err (!%p637_p4)
}
   0xb   :  { %s687_s29 = smov 128   ;;  %s688_s30 = smov 8  }
   0xc   :  { %41 = dma.hbm_to_vmem [thread:$0]  %s820_s3, 4096, %s36_s25, [#allocation5], %s687_s29, %s687_s29, %s688_s30  }
   0xd   :  { %s649_s10 = scalar_lea.vmem %s22_s27, 256  ;;  %p654_p6 = scmp.lt.s32.totalorder %s22_s27, %s22_s27 }
   0xe   :  { %p650_p5 = scmp.ne.s32.totalorder %s22_s27, %s649_s10  ;;  %p655_p7 = scmp.lt.s32.totalorder %s649_s10, %s649_s10 }
  0x10   :  { %p656_p8 = por %p655_p7, %p654_p6 }
  0x12   :  { %p657_p9 = pnand %p656_p8, %p650_p5 }
  0x14   :  { %660 = shalt.err (!%p657_p9)
}
  0x15   :  { %27 = dma.hbm_to_vmem [thread:$0]  %s818_s1, 256, %s22_s27, [#allocation3], %s687_s29, %s687_s29, %s688_s30  }
  0x16   :  { %s689_s13 = smov [#allocation6]  }
  0x17   :  { %s49_s14 = sshll.u32 %s689_s13, 4  ;;  %s50_s14 = int_to_ptr.vmem [resolvable:$true] %s49_s14 }
  0x18   :  { %s669_s15 = scalar_lea.vmem %s50_s14, 2048  ;;  %p674_p11 = scmp.lt.s32.totalorder %s50_s14, %s50_s14 }
  0x19   :  { %p670_p10 = scmp.ne.s32.totalorder %s50_s14, %s669_s15  ;;  %p675_p12 = scmp.lt.s32.totalorder %s669_s15, %s669_s15 }
  0x1b   :  { %p676_p13 = por %p675_p12, %p674_p11 }
  0x1d   :  { %p677_p0 = pnand %p676_p13, %p670_p10 }
  0x1f   :  { %680 = shalt.err (!%p677_p0)
}
  0x20   :  { %55 = dma.hbm_to_vmem [thread:$0]  %s822_s5, 2048, %s50_s14, [#allocation5], %s687_s29, %s687_s29, %s688_s30  }
  0x21   :  { %681 = dma.done.wait [#allocation3], 256  }
  0x22   :  { %682 = vsyncadd [#allocation3], 4294967040 }
  0x23   :  { %683 = dma.done.wait [#allocation5], 6144  }
  0x24   :  { %684 = vsyncadd [#allocation5], 4294961152  ;;  %v690_v0 = vmov 0.0   ;;  %vm691_vm0 = vmmov 0   ;;  %v69_v1 = vld [vmem:[#allocation2 + $0x8] sm:$0xff]  ;;  %v68_v2 = vld [vmem:[#allocation2] sm:$0xff] }
  0x25   :  { %502 = vmatprep.subr.mxu0 %v690_v0  ;;  %506 = vmatprep.mubr.msk.f32.mxu0 %vm691_vm0, %v690_v0  ;;  %v67_v3 = vld [vmem:[%s817_s0] sm:$0xff]  ;;  %vm77_vm1 = vcmask 130048   ;;  %v167_v4 = vld [vmem:[#allocation4 + $0x78] sm:$0xff]  ;;  %v165_v6 = vld [vmem:[#allocation4 + $0x68] sm:$0xff] }
  0x26   :  { %509 = vmatprep.subr.mxu1 %v690_v0  ;;  %541 = vmatprep.mubr.msk.f32.mxu1 %vm691_vm0, %v690_v0  ;;  %v166_v5 = vld [vmem:[#allocation4 + $0x70] sm:$0xff]  ;;  %v164_v7 = vld [vmem:[#allocation4 + $0x60] sm:$0xff]  ;;  %v163_v8 = vld [vmem:[#allocation4 + $0x58] sm:$0xff] }
  0x27   :  { %503 = vmatpush3.msra.mxu0 %v69_v1  ;;  %510 = vmatpush3.msra.mxu1 %v167_v4  ;;  %v162_v9 = vld [vmem:[#allocation4 + $0x50] sm:$0xff]  ;;  %v161_v10 = vld [vmem:[#allocation4 + $0x48] sm:$0xff]  ;;  %v160_v11 = vld [vmem:[#allocation4 + $0x40] sm:$0xff] }
  0x28   :  { %504 = vmatprep.subr.mxu0 %v690_v0  ;;  %511 = vmatprep.subr.mxu1 %v690_v0  ;;  %v159_v12 = vld [vmem:[#allocation4 + $0x38] sm:$0xff]  ;;  %v158_v13 = vld [vmem:[#allocation4 + $0x30] sm:$0xff]  ;;  %v157_v14 = vld [vmem:[#allocation4 + $0x28] sm:$0xff] }
  0x29   :  { %505 = vmatpush3.msra.mxu0 %v68_v2  ;;  %512 = vmatpush3.msra.mxu1 %v166_v5  ;;  %v156_v15 = vld [vmem:[#allocation4 + $0x20] sm:$0xff]  ;;  %v155_v16 = vld [vmem:[#allocation4 + $0x18] sm:$0xff]  ;;  %v154_v17 = vld [vmem:[#allocation4 + $0x10] sm:$0xff] }
  0x2a   :  { %507 = vmatmul.mubr.msk.f32.vlgmr.msra.gmra.mxu0 %vm77_vm1, %v67_v3  ;;  %513 = vmatprep.subr.mxu1 %v690_v0  ;;  %v153_v18 = vld [vmem:[#allocation4 + $0x8] sm:$0xff]  ;;  %v152_v19 = vld [vmem:[#allocation4] sm:$0xff]  ;;  %v262_v20 = vld [vmem:[#allocation4 + $0xf8] sm:$0xff] }
  0x2b   :  { %544 = vmatprep.subr.mxu0 %v690_v0  ;;  %514 = vmatpush3.msra.mxu1 %v165_v6  ;;  %v261_v21 = vld [vmem:[#allocation4 + $0xf0] sm:$0xff]  ;;  %v260_v22 = vld [vmem:[#allocation4 + $0xe8] sm:$0xff]  ;;  %v259_v23 = vld [vmem:[#allocation4 + $0xe0] sm:$0xff] }
  0x2c   :  { %576 = vmatprep.mubr.msk.f32.mxu0 %vm691_vm0, %v690_v0  ;;  %515 = vmatprep.subr.mxu1 %v690_v0  ;;  %v258_v24 = vld [vmem:[#allocation4 + $0xd8] sm:$0xff]  ;;  %v257_v25 = vld [vmem:[#allocation4 + $0xd0] sm:$0xff]  ;;  %v256_v26 = vld [vmem:[#allocation4 + $0xc8] sm:$0xff] }
  0x2d   :  { %516 = vmatpush3.msra.mxu1 %v164_v7  ;;  %545 = vmatpush3.msra.mxu0 %v262_v20  ;;  %v255_v27 = vld [vmem:[#allocation4 + $0xc0] sm:$0xff]  ;;  %v254_v28 = vld [vmem:[#allocation4 + $0xb8] sm:$0xff]  ;;  %v253_v29 = vld [vmem:[#allocation4 + $0xb0] sm:$0xff] }
  0x2e   :  { %517 = vmatprep.subr.mxu1 %v690_v0  ;;  %546 = vmatprep.subr.mxu0 %v690_v0  ;;  %v252_v30 = vld [vmem:[#allocation4 + $0xa8] sm:$0xff]  ;;  %v251_v31 = vld [vmem:[#allocation4 + $0xa0] sm:$0xff]  ;;  %v250_v32 = vld [vmem:[#allocation4 + $0x98] sm:$0xff] }
  0x2f   :  { %518 = vmatpush3.msra.mxu1 %v163_v8  ;;  %547 = vmatpush3.msra.mxu0 %v261_v21  ;;  %v442_v33 = vld [vmem:[%s819_s2] ss:$0 sm:$0xff]  ;;  %v248_v39 = vld [vmem:[#allocation4 + $0x88] sm:$0xff]  ;;  %v247_v40 = vld [vmem:[#allocation4 + $0x80] sm:$0xff] }
  0x30   :  { %519 = vmatprep.subr.mxu1 %v690_v0  ;;  %548 = vmatprep.subr.mxu0 %v690_v0  ;;  %v249_v38 = vld [vmem:[#allocation4 + $0x90] sm:$0xff]  ;;  %v357_v41 = vld [vmem:[#allocation6 + $0x78] sm:$0xff]  ;;  %v355_v43 = vld [vmem:[#allocation6 + $0x68] sm:$0xff] }
  0x31   :  { %520 = vmatpush3.msra.mxu1 %v162_v9  ;;  %549 = vmatpush3.msra.mxu0 %v260_v22  ;;  %v356_v42 = vld [vmem:[#allocation6 + $0x70] sm:$0xff]  ;;  %v354_v44 = vld [vmem:[#allocation6 + $0x60] sm:$0xff]  ;;  %v353_v45 = vld [vmem:[#allocation6 + $0x58] sm:$0xff] }
  0x32   :  { %521 = vmatprep.subr.mxu1 %v690_v0  ;;  %550 = vmatprep.subr.mxu0 %v690_v0  ;;  %v352_v46 = vld [vmem:[#allocation6 + $0x50] sm:$0xff]  ;;  %v351_v47 = vld [vmem:[#allocation6 + $0x48] sm:$0xff]  ;;  %v350_v48 = vld [vmem:[#allocation6 + $0x40] sm:$0xff] }
  0x33   :  { %522 = vmatpush3.msra.mxu1 %v161_v10  ;;  %551 = vmatpush3.msra.mxu0 %v259_v23  ;;  %v349_v49 = vld [vmem:[#allocation6 + $0x38] sm:$0xff]  ;;  %v348_v50 = vld [vmem:[#allocation6 + $0x30] sm:$0xff]  ;;  %v347_v51 = vld [vmem:[#allocation6 + $0x28] sm:$0xff] }
  0x34   :  { %523 = vmatprep.subr.mxu1 %v690_v0  ;;  %552 = vmatprep.subr.mxu0 %v690_v0  ;;  %v346_v52 = vld [vmem:[#allocation6 + $0x20] sm:$0xff]  ;;  %v345_v53 = vld [vmem:[#allocation6 + $0x18] sm:$0xff]  ;;  %v444_v54 = vld [vmem:[%s821_s4] ss:$0 sm:$0xff] }
  0x35   :  { %524 = vmatpush3.msra.mxu1 %v160_v11  ;;  %553 = vmatpush3.msra.mxu0 %v258_v24  ;;  %v344_v59 = vld [vmem:[#allocation6 + $0x10] sm:$0xff]  ;;  %v343_v60 = vld [vmem:[#allocation6 + $0x8] sm:$0xff]  ;;  %v342_v61 = vld [vmem:[#allocation6] sm:$0xff] }
  0x36   :  { %525 = vmatprep.subr.mxu1 %v690_v0  ;;  %554 = vmatprep.subr.mxu0 %v690_v0  ;;  %v446_v62 = vld [vmem:[%s821_s4 + $0x1] ss:$0 sm:$0xff]  ;;  %v447_v4 = vld [vmem:[%s823_s6] ss:$0 sm:$0xff] }
  0x37   :  { %526 = vmatpush3.msra.mxu1 %v159_v12  ;;  %555 = vmatpush3.msra.mxu0 %v257_v25 }
  0x38   :  { %527 = vmatprep.subr.mxu1 %v690_v0  ;;  %556 = vmatprep.subr.mxu0 %v690_v0 }
  0x39   :  { %528 = vmatpush3.msra.mxu1 %v158_v13  ;;  %557 = vmatpush3.msra.mxu0 %v256_v26 }
  0x3a   :  { %529 = vmatprep.subr.mxu1 %v690_v0  ;;  %558 = vmatprep.subr.mxu0 %v690_v0 }
  0x3b   :  { %530 = vmatpush3.msra.mxu1 %v157_v14  ;;  %559 = vmatpush3.msra.mxu0 %v255_v27 }
  0x3c   :  { %531 = vmatprep.subr.mxu1 %v690_v0  ;;  %560 = vmatprep.subr.mxu0 %v690_v0 }
  0x3d   :  { %532 = vmatpush3.msra.mxu1 %v156_v15  ;;  %561 = vmatpush3.msra.mxu0 %v254_v28 }
  0x3e   :  { %533 = vmatprep.subr.mxu1 %v690_v0  ;;  %562 = vmatprep.subr.mxu0 %v690_v0 }
  0x3f   :  { %534 = vmatpush3.msra.mxu1 %v155_v16  ;;  %563 = vmatpush3.msra.mxu0 %v253_v29 }
  0x40   :  { %535 = vmatprep.subr.mxu1 %v690_v0  ;;  %564 = vmatprep.subr.mxu0 %v690_v0 }
  0x41   :  { %536 = vmatpush3.msra.mxu1 %v154_v17  ;;  %565 = vmatpush3.msra.mxu0 %v252_v30 }
  0x42   :  { %537 = vmatprep.subr.mxu1 %v690_v0  ;;  %566 = vmatprep.subr.mxu0 %v690_v0 }
  0x43   :  { %538 = vmatpush3.msra.mxu1 %v153_v18  ;;  %567 = vmatpush3.msra.mxu0 %v251_v31 }
  0x44   :  { %539 = vmatprep.subr.mxu1 %v690_v0  ;;  %568 = vmatprep.subr.mxu0 %v690_v0 }
  0x45   :  { %540 = vmatpush3.msra.mxu1 %v152_v19  ;;  %569 = vmatpush3.msra.mxu0 %v250_v32 }
  0x46   :  { %579 = vmatprep.subr.mxu1 %v690_v0  ;;  %570 = vmatprep.subr.mxu0 %v690_v0 }
  0x47   :  { %571 = vmatpush3.msra.mxu0 %v249_v38 }
  0x48   :  { %572 = vmatprep.subr.mxu0 %v690_v0 }
  0x49   :  { %573 = vmatpush3.msra.mxu0 %v248_v39 }
  0x4a   :  { %574 = vmatprep.subr.mxu0 %v690_v0 }
  0x4b   :  { %575 = vmatpush3.msra.mxu0 %v247_v40 }
  0xea   :  { %v147_v34 = vpop.f32.mrf.mxu0 }
  0xeb   :  { %v148_v35 = vadd.f32 %v442_v33, %v147_v34 }
  0xec   :  { %v508_v36 = vpop.f32.mrf.mxu0 }
  0xed   :  { %v151_v37 = vmax.f32 %v148_v35, 0.0 }
  0xef   :  { %542 = vmatmul.mubr.f32.vlgmr.msra.gmra.mxu1 %v151_v37 }
  0xf0   :  { %611 = vmatprep.mubr.msk.f32.mxu1 %vm691_vm0, %v690_v0  ;;  %580 = vmatpush3.msra.mxu1 %v357_v41 }
  0xf1   :  { %581 = vmatprep.subr.mxu1 %v690_v0 }
  0xf2   :  { %582 = vmatpush3.msra.mxu1 %v356_v42 }
  0xf3   :  { %583 = vmatprep.subr.mxu1 %v690_v0 }
  0xf4   :  { %584 = vmatpush3.msra.mxu1 %v355_v43 }
  0xf5   :  { %585 = vmatprep.subr.mxu1 %v690_v0 }
  0xf6   :  { %586 = vmatpush3.msra.mxu1 %v354_v44 }
  0xf7   :  { %587 = vmatprep.subr.mxu1 %v690_v0 }
  0xf8   :  { %588 = vmatpush3.msra.mxu1 %v353_v45 }
  0xf9   :  { %589 = vmatprep.subr.mxu1 %v690_v0 }
  0xfa   :  { %590 = vmatpush3.msra.mxu1 %v352_v46 }
  0xfb   :  { %591 = vmatprep.subr.mxu1 %v690_v0 }
  0xfc   :  { %592 = vmatpush3.msra.mxu1 %v351_v47 }
  0xfd   :  { %593 = vmatprep.subr.mxu1 %v690_v0 }
  0xfe   :  { %594 = vmatpush3.msra.mxu1 %v350_v48 }
  0xff   :  { %595 = vmatprep.subr.mxu1 %v690_v0 }
 0x100   :  { %596 = vmatpush3.msra.mxu1 %v349_v49 }
 0x101   :  { %597 = vmatprep.subr.mxu1 %v690_v0 }
 0x102   :  { %598 = vmatpush3.msra.mxu1 %v348_v50 }
 0x103   :  { %599 = vmatprep.subr.mxu1 %v690_v0 }
 0x104   :  { %600 = vmatpush3.msra.mxu1 %v347_v51 }
 0x105   :  { %601 = vmatprep.subr.mxu1 %v690_v0 }
 0x106   :  { %602 = vmatpush3.msra.mxu1 %v346_v52 }
 0x107   :  { %603 = vmatprep.subr.mxu1 %v690_v0 }
 0x108   :  { %604 = vmatpush3.msra.mxu1 %v345_v53 }
 0x109   :  { %605 = vmatprep.subr.mxu1 %v690_v0 }
 0x10a   :  { %606 = vmatpush3.msra.mxu1 %v344_v59 }
 0x10b   :  { %607 = vmatprep.subr.mxu1 %v690_v0 }
 0x10c   :  { %608 = vmatpush3.msra.mxu1 %v343_v60 }
 0x10d   :  { %609 = vmatprep.subr.mxu1 %v690_v0 }
 0x10e   :  { %610 = vmatpush3.msra.mxu1 %v342_v61 }
 0x1af   :  { %v241_v55 = vpop.f32.mrf.mxu1 }
 0x1b0   :  { %v242_v56 = vadd.f32 %v444_v54, %v241_v55 }
 0x1b1   :  { %v543_v57 = vpop.f32.mrf.mxu1 }
 0x1b2   :  { %v245_v58 = vmax.f32 %v242_v56, 0.0 }
 0x1b4   :  { %577 = vmatmul.mubr.f32.vlgmr.msra.gmra.mxu0 %v245_v58 }
 0x274   :  { %v337_v63 = vpop.f32.mrf.mxu0 }
 0x275   :  { %v338_v1 = vadd.f32 %v446_v62, %v337_v63 }
 0x276   :  { %v578_v2 = vpop.f32.mrf.mxu0 }
 0x277   :  { %v341_v3 = vmax.f32 %v338_v1, 0.0 }
 0x279   :  { %612 = vmatmul.mubr.f32.vlgmr.msra.gmra.mxu1 %v341_v3 }
 0x339   :  { %v431_v5 = vpop.f32.mrf.mxu1 }
 0x33a   :  { %v432_v6 = vadd.f32 %v447_v4, %v431_v5 }
 0x33b   :  { %v613_v7 = vpop.f32.mrf.mxu1 }
 0x33c   :  { %435 = vst [vmem:[%s824_s7] sm:$0xff] %v432_v6 }
 0x33d   :  { %440 = vsyncpa [#allocation3], 1 }
 0x33e   :  { %441 = vsyncpa [#allocation5], 1 }

</bundles_post_ra>
